<compile_context>
chip_gen: v7x
topology: tpu7x:2x2x1
jax: 0.10.0
libtpu: 0.0.40
codegen_flags: <defaults>
</compile_context>

<pallas_src>
from functools import partial

import jax
import jax.numpy as jnp
from jax.experimental import pallas as pl
from jax.experimental.pallas import tpu as pltpu

_LANES = 128
_SUBLANES = 8
_MAX_TILE_ROWS_REDUCE = 8192   # 4 MiB f32 block; 2 streams x 2 buffers = 16 MiB
_MAX_TILE_ROWS_NONE = 4096     # 2 MiB f32 block; 3 streams x 2 buffers = 12 MiB
_VMEM_LIMIT_BYTES = 32 * 1024 * 1024


def _cdiv(a: int, b: int) -> int:
    return -(-a // b)


def _round_up(a: int, b: int) -> int:
    return _cdiv(a, b) * b


def _pick_tile_rows(rows_total: int, max_rows: int) -> int:
    """Pick a sublane-aligned row tile; keep >=2 grid steps when possible (v7x megacore)."""
    half = _round_up(max(rows_total // 2, 1), _SUBLANES)
    tile = max(_SUBLANES, min(max_rows, half))
    return min(tile, _round_up(rows_total, _SUBLANES))


# ----------------------------- kernels --------------------------------------

def _make_l1_partial_sum_kernel(tile_rows: int, rem_rows: int):
    """Per-tile partial sum of |x - y| -> lane-dense (1, 128) slab per grid step.

    `rem_rows` (valid rows in the last grid block) is a static Python int; when
    it is short we mask the ragged tail rows with an iota compare instead of
    padding the inputs in HBM.
    """
    needs_mask = rem_rows != tile_rows

    def kernel(x_ref, y_ref, out_ref):
        x = x_ref[...].astype(jnp.float32)
        y = y_ref[...].astype(jnp.float32)
        d = jnp.abs(x - y)
        if needs_mask:
            last = pl.num_programs(0) - 1

            @pl.when(pl.program_id(0) == last)
            def _():
                rows = jax.lax.broadcasted_iota(jnp.int32, d.shape, 0)
                out_ref[...] = jnp.sum(jnp.where(rows < rem_rows, d, 0.0),
                                       axis=0, keepdims=True)

            @pl.when(pl.program_id(0) != last)
            def _():
                out_ref[...] = jnp.sum(d, axis=0, keepdims=True)
        else:
            out_ref[...] = jnp.sum(d, axis=0, keepdims=True)

    return kernel


def _l1_none_kernel(x_ref, y_ref, out_ref):
    """Elementwise |x - y|; boundary-block garbage rows are clipped on write."""
    x = x_ref[...]
    y = y_ref[...]
    if x.dtype == out_ref.dtype and y.dtype == out_ref.dtype:
        # Native-dtype path (bf16 VALU on v6e/v7x; Mosaic widens as needed elsewhere).
        out_ref[...] = jnp.abs(x - y)
    else:
        out_ref[...] = jnp.abs(
            x.astype(jnp.float32) - y.astype(jnp.float32)).astype(out_ref.dtype)


# ----------------------------- jitted forward --------------------------------

@partial(jax.jit, static_argnames=("reduction",))
def _l1_loss(x, y, reduction):
    orig_shape = x.shape
    out_dtype = jnp.result_type(x.dtype, y.dtype)
    n = int(x.size)

    if n == 0:
        if reduction == "none":
            return jnp.zeros(orig_shape, out_dtype)
        if reduction == "sum":
            return jnp.zeros((), out_dtype)
        return jnp.full((), jnp.nan, out_dtype)  # torch: mean over 0 elements -> nan

    xf = x.reshape(-1)
    yf = y.reshape(-1)
    rows_total = _cdiv(n, _LANES)
    padded_n = rows_total * _LANES
    if padded_n != n:
        # Only the <128-element lane remainder is padded (|0 - 0| = 0).
        xf = jnp.pad(xf, (0, padded_n - n))
        yf = jnp.pad(yf, (0, padded_n - n))
    x2 = xf.reshape(rows_total, _LANES)
    y2 = yf.reshape(rows_total, _LANES)
    in_bytes = x2.dtype.itemsize + y2.dtype.itemsize

    if reduction == "none":
        tile_rows = _pick_tile_rows(rows_total, _MAX_TILE_ROWS_NONE)
        num_tiles = _cdiv(rows_total, tile_rows)
        row_spec = pl.BlockSpec((tile_rows, _LANES), lambda i: (i, 0))
        out = pl.pallas_call(
            _l1_none_kernel,
            out_shape=jax.ShapeDtypeStruct((rows_total, _LANES), out_dtype),
            grid_spec=pltpu.PrefetchScalarGridSpec(
                num_scalar_prefetch=0,
                grid=(num_tiles,),
                in_specs=[row_spec, row_spec],
                out_specs=row_spec,
            ),
            compiler_params=pltpu.CompilerParams(
                dimension_semantics=("parallel",),
                vmem_limit_bytes=_VMEM_LIMIT_BYTES),
            cost_estimate=pl.CostEstimate(
                flops=2 * n, transcendentals=0,
                bytes_accessed=n * (in_bytes + jnp.dtype(out_dtype).itemsize)),
        )(x2, y2)
        out_flat = out.reshape(-1)
        if padded_n != n:
            out_flat = out_flat[:n]
        return out_flat.reshape(orig_shape)

    # 'mean' / 'sum': parallel per-tile partial sums (both v7x TCs can run
    # tiles), then one trivial cross-lane reduce in plain JAX.
    tile_rows = _pick_tile_rows(rows_total, _MAX_TILE_ROWS_REDUCE)
    num_tiles = _cdiv(rows_total, tile_rows)
    rem_rows = rows_total - (num_tiles - 1) * tile_rows
    row_spec = pl.BlockSpec((tile_rows, _LANES), lambda i: (i, 0))
    partial_spec = pl.BlockSpec((1, _LANES), lambda i: (0, i))

    partials = pl.pallas_call(
        _make_l1_partial_sum_kernel(tile_rows, rem_rows),
        out_shape=jax.ShapeDtypeStruct((1, num_tiles * _LANES), jnp.float32),
        grid_spec=pltpu.PrefetchScalarGridSpec(
            num_scalar_prefetch=0,
            grid=(num_tiles,),
            in_specs=[row_spec, row_spec],
            out_specs=partial_spec,
        ),
        compiler_params=pltpu.CompilerParams(
            dimension_semantics=("parallel",),
            vmem_limit_bytes=_VMEM_LIMIT_BYTES),
        cost_estimate=pl.CostEstimate(
            flops=3 * n, transcendentals=0,
            bytes_accessed=n * in_bytes + num_tiles * _LANES * 4),
    )(x2, y2)

    total = jnp.sum(partials)
    if reduction == "mean":
        total = total / jnp.float32(n)
    return total.astype(out_dtype)


# ----------------------------- module wrapper --------------------------------

class L1Loss:
    """Pallas-TPU implementation of the torch.nn.L1Loss forward pass."""

    def __init__(self, size_average=None, reduce=None, reduction: str = "mean"):
        # Legacy-arg handling (mirrors torch.nn._reduction.legacy_get_string).
        if size_average is not None or reduce is not None:
            if reduce is False:
                reduction = "none"
            elif size_average is False:
                reduction = "sum"
            else:
                reduction = "mean"
        assert reduction in ("mean", "sum", "none")
        self.reduction = reduction

    def __call__(self, input, target):
        assert input.shape == target.shape, "input and target must have the same shape"
        # TODO(synk): complex-valued inputs (supported by torch L1Loss) not handled.
        return _l1_loss(jnp.asarray(input), jnp.asarray(target), self.reduction)


# ----------------------------- demo / self-check ------------------------------

if __name__ == "__main__":
    key = jax.random.PRNGKey(0)
    k1, k2, k3, k4, k5, k6, k7, k8 = jax.random.split(key, 8)

    # batch=2, channels=4, spatial=16x16 (numel = 2048, lane-aligned, 2 tiles)
    x = jax.random.normal(k1, (2, 4, 16, 16), dtype=jnp.float32)
    y = jax.random.normal(k2, (2, 4, 16, 16), dtype=jnp.float32)
    loss = jax.block_until_ready(L1Loss(reduction="mean")(x, y))
    ref = jnp.mean(jnp.abs(x - y))
    assert jnp.allclose(loss, ref, rtol=1e-5, atol=1e-5), (loss, ref)

    # torch docstring shape (3, 5): exercises the lane-remainder pad + row mask.
    a = jax.random.normal(k3, (3, 5), dtype=jnp.float32)
    b = jax.random.normal(k4, (3, 5), dtype=jnp.float32)
    s = jax.block_until_ready(L1Loss(reduction="sum")(a, b))
    assert jnp.allclose(s, jnp.sum(jnp.abs(a - b)), rtol=1e-5, atol=1e-5), s
    e = jax.block_until_ready(L1Loss(reduction="none")(a, b))
    assert e.shape == a.shape and e.dtype == a.dtype
    assert jnp.allclose(e, jnp.abs(a - b), rtol=1e-5, atol=1e-5)

    # ragged multi-tile case: 7*300 = 2100 elems -> 17 rows, 3 tiles, masked tail row.
    c = jax.random.normal(k5, (7, 300), dtype=jnp.float32)
    d = jax.random.normal(k6, (7, 300), dtype=jnp.float32)
    m = jax.block_until_ready(L1Loss(reduction="mean")(c, d))
    assert jnp.allclose(m, jnp.mean(jnp.abs(c - d)), rtol=1e-5, atol=1e-5), m

    # bf16 'none' native-dtype path.
    p = jax.random.normal(k7, (4, 64), dtype=jnp.bfloat16)
    q = jax.random.normal(k8, (4, 64), dtype=jnp.bfloat16)
    o = jax.block_until_ready(L1Loss(reduction="none")(p, q))
    assert o.dtype == jnp.bfloat16 and o.shape == p.shape
    assert jnp.allclose(o.astype(jnp.float32),
                        jnp.abs(p.astype(jnp.float32) - q.astype(jnp.float32)),
                        rtol=1e-2, atol=1e-2)

    print("KERNEL_OK")
</pallas_src>

<mosaic_0001>
module attributes {stable_mosaic.version = 11 : i64} {
  func.func @kernel(%arg0: i32, %arg1: memref<8x128xf32, #tpu.memory_space<vmem>>, %arg2: memref<8x128xf32, #tpu.memory_space<vmem>>, %arg3: memref<1x128xf32, #tpu.memory_space<vmem>>) attributes {dimension_semantics = [#tpu.dimension_semantics<parallel>], iteration_bounds = array<i64: 2>, scalar_prefetch = 0 : i64, scratch_operands = 0 : i64, tpu.core_type = #tpu.core_type<tc>, window_params = [{transform_indices = @transform_0, window_bounds = array<i64: 8, 128>}, {transform_indices = @transform_1, window_bounds = array<i64: 8, 128>}, {transform_indices = @transform_2, window_bounds = array<i64: 1, 128>}]} {
    %c0 = arith.constant 0 : index
    %c0_0 = arith.constant 0 : index
    %0 = vector.load %arg1[%c0, %c0_0] : memref<8x128xf32, #tpu.memory_space<vmem>>, vector<8x128xf32>
    %c0_1 = arith.constant 0 : index
    %c0_2 = arith.constant 0 : index
    %1 = vector.load %arg2[%c0_1, %c0_2] : memref<8x128xf32, #tpu.memory_space<vmem>>, vector<8x128xf32>
    %2 = arith.subf %0, %1 : vector<8x128xf32>
    %3 = math.absf %2 : vector<8x128xf32>
    %cst = arith.constant dense<0.000000e+00> : vector<128xf32>
    %4 = vector.multi_reduction <add>, %3, %cst [0] : vector<8x128xf32> to vector<128xf32>
    %5 = vector.shape_cast %4 : vector<128xf32> to vector<1x128xf32>
    %c0_3 = arith.constant 0 : index
    %c0_4 = arith.constant 0 : index
    %6 = vector.load %arg3[%c0_3, %c0_4] : memref<1x128xf32, #tpu.memory_space<vmem>>, vector<1x128xf32>
    tpu.vector_store %arg3[%c0_3, %c0_4], %5 {strides = array<i32>} : memref<1x128xf32, #tpu.memory_space<vmem>>, vector<1x128xf32>,
    return
  }
  func.func @transform_0(%arg0: i32) -> (i32, i32) {
    %c0_i32 = arith.constant 0 : i32
    %c0_i32_0 = arith.constant 0 : i32
    return %arg0, %c0_i32 : i32, i32
  }
  func.func @transform_1(%arg0: i32) -> (i32, i32) {
    %c0_i32 = arith.constant 0 : i32
    %c0_i32_0 = arith.constant 0 : i32
    return %arg0, %c0_i32 : i32, i32
  }
  func.func @transform_2(%arg0: i32) -> (i32, i32) {
    %c0_i32 = arith.constant 0 : i32
    %c0_i32_0 = arith.constant 0 : i32
    return %c0_i32, %arg0 : i32, i32
  }
}

</mosaic_0001>

<bundles_post_ra>
// kernel: _l1_loss.1
= control target key start
LH: loop header
LB: loop body
LE: loop exit
PB: predicated region body
PF: predicated region fallthrough
CT: control target
= control target key end

     0   :  { %s264_s9 = smov 0   ;;  %s278_s0 = inlined_call_operand.vmem [shape: f32[16,128], index: 0, kind: input, shape index: {}]   ;;  %s279_s1 = inlined_call_operand.vmem [shape: f32[16,128], index: 1, kind: input, shape index: {}]   ;;  %s280_s2 = inlined_call_operand.vmem [shape: f32[1,256], index: 2, kind: output, shape index: {}]  }
   0x1 LB: > { %s224_s10 = sadd.s32 4294967295, %s247_s9   ;;  %p228_p0 = scmp.ge.s32.totalorder %s247_s9, 1  ;;  %s247_s9 = sphi %s264_s9, %s12_s9  }
   0x2   : > { %p120_p1 = scmp.lt.s32.totalorder %s247_s9, 3 }
   0x4   : > { %p121_p2 = pnand %p228_p0, %p120_p1 }
   0x5   : > { %p143_p3 = scmp.lt.s32.totalorder (!%p121_p2), %s224_s10, 1 }
   0x6   : > { %124 = sbr.rel (%p121_p2) target bundleno = 35 (0x23), region = 28 }
   0xd   : > { %s282_s10 = smov (!%p143_p3, %s224_s10), 1 }
   0xe   : > { %s229_s11 = sshll.u32 %s282_s10, 3  ;;  %s153_s20 = scalar_lea.vmem %s280_s2, %s282_s10 }
   0xf   : > { %s146_s14 = scalar_lea.vmem %s278_s0, %s229_s11  ;;  %s150_s17 = scalar_lea.vmem %s279_s1, %s229_s11 }
  0x10   : > { %v154_v0 = vld [vmem:[%s146_s14] sm:$0xff] }
  0x11   : > { %v155_v1 = vld [vmem:[%s150_s17] sm:$0xff] }
  0x12   : > { %v156_v2 = vsub.f32 %v154_v0, %v155_v1 }
  0x14   : > { %v157_v3 = vand.u32 2147483647, %v156_v2 }
  0x16   : > { %v158_v4 = vrot.slane %v157_v3, 4 }
  0x18   : > { %v159_v5 = vadd.f32 %v158_v4, %v157_v3 }
  0x1a   : > { %v160_v6 = vrot.slane %v159_v5, 2 }
  0x1c   : > { %v161_v7 = vadd.f32 %v160_v6, %v159_v5 }
  0x1e   : > { %v162_v8 = vrot.slane %v161_v7, 1 }
  0x20   : > { %v163_v9 = vadd.f32 %v162_v8, %v161_v7 }
  0x22   : > { %164 = vst [vmem:[%s153_s20] sm:$0x1] %v163_v9 }
  0x23 PF: > { %s12_s9 = sadd.s32 1, %s247_s9  }
  0x24   : > { %p9_p4 = scmp.ge.s32.totalorder %s12_s9, 4  }
  0x26   :  { %11 = sbr.rel (!%p9_p4) target bundleno = 1 (0x1), region = 61 }

</bundles_post_ra>
